<compile_context>
chip_gen: v7x
topology: tpu7x:2x2x1
jax: 0.10.0
libtpu: 0.0.40
codegen_flags: <defaults>
</compile_context>

<pallas_src>
import functools

import jax
import jax.numpy as jnp
from jax.experimental import pallas as pl
from jax.experimental.pallas import tpu as pltpu


def _lstm_cell(gates, c, H):
    """Gate columns are pre-permuted to [i, f, o | g]."""
    sig = jax.nn.sigmoid(gates[:, :3 * H])        # i | f | o
    g = jnp.tanh(gates[:, 3 * H:4 * H])           # g
    c_new = sig[:, H:2 * H] * c + sig[:, :H] * g
    h_new = sig[:, 2 * H:3 * H] * jnp.tanh(c_new)
    return h_new, c_new


def _decoder_kernel_l1(x0_ref, h0_ref, c0_ref, wx_ref, wh_ref, b_ref,
                       wrec_ref, brec_ref, out_ref, *, seq_len, H):
    """L == 1 fast path: FC head folded into the recurrence.

    Step 0 consumes the real x0 via the general two-dot path; every later step
    is a single dot h @ W_rec_ext whose last column is the previous step's
    readout lane.  The final readout is computed after the loop.
    """
    h = h0_ref[...]                                   # (B, H)
    c = c0_ref[...]                                   # (B, H)

    # --- decode step 0: uses the real x0 ---------------------------------
    gates0 = (jnp.dot(x0_ref[...], wx_ref[...], preferred_element_type=jnp.float32)
              + jnp.dot(h, wh_ref[...], preferred_element_type=jnp.float32)
              + b_ref[...])                           # (B, 4H), bias pre-broadcast
    h, c = _lstm_cell(gates0, c, H)

    # --- decode steps 1 .. seq_len-1: folded recurrence -------------------
    wrec = wrec_ref[...]                              # (H, 4H+1)
    brec = brec_ref[...]                              # (B, 4H+1), pre-broadcast
    out_cols = []
    for _ in range(seq_len - 1):                      # static unroll (small seq_len)
        ext = jnp.dot(h, wrec, preferred_element_type=jnp.float32) + brec
        out_cols.append(ext[:, 4 * H:4 * H + 1])      # readout of current h
        h, c = _lstm_cell(ext[:, :4 * H], c, H)

    # readout for the last decode step
    last = (jnp.dot(h, wrec[:, 4 * H:4 * H + 1], preferred_element_type=jnp.float32)
            + brec[:, 4 * H:4 * H + 1])
    out_cols.append(last)

    out_ref[...] = jnp.concatenate(out_cols, axis=1)  # single store (B, seq_len)


def _decoder_kernel_general(x0_ref, h0_ref, c0_ref, wx_ref, wh_ref, b_ref,
                            wfc_ref, bfc_ref, out_ref, *, seq_len, L, H):
    """General path (any L): two dots per timestep, no lane concat."""
    h = h0_ref[...]                                   # (B, H)
    c = c0_ref[...]                                   # (B, H)
    wx = wx_ref[...]                                  # (I, 4H)
    wh = wh_ref[...]                                  # (H, 4H)
    b = b_ref[...]                                    # (B, 4H)  pre-broadcast
    wfc = wfc_ref[...]                                # (H, I)
    bfc = bfc_ref[...]                                # (B, I)   pre-broadcast

    x_cols = [x0_ref[:, l, :] for l in range(L)]      # L separate (B, I) carries

    out_cols = []
    for _ in range(seq_len):                          # static unrolled decode loop
        for l in range(L):                            # static unrolled LSTM time loop
            gates = (jnp.dot(x_cols[l], wx, preferred_element_type=jnp.float32)
                     + jnp.dot(h, wh, preferred_element_type=jnp.float32)
                     + b)                             # (B, 4H)
            h, c = _lstm_cell(gates, c, H)
            fc_out = jnp.dot(h, wfc, preferred_element_type=jnp.float32) + bfc
            x_cols[l] = fc_out                        # feedback for next decode step
            out_cols.append(fc_out[:, -1:])           # last-feature readout

    out_ref[...] = jnp.concatenate(out_cols, axis=1)  # single store (B, seq_len*L)


def _reorder_gates(a):
    """Permute PyTorch LSTM gate order [i, f, g, o] -> [i, f, o, g] (last axis)."""
    H = a.shape[-1] // 4
    return jnp.concatenate([a[..., :2 * H], a[..., 3 * H:], a[..., 2 * H:3 * H]],
                           axis=-1)


def decoder_forward(xt, hidden, cell, params, seq_len):
    B, L, I = xt.shape
    H = hidden.shape[-1]

    # Gate weights/bias, reordered to [i, f, o, g] and pre-transposed.
    wx = _reorder_gates(params["w_ih"].T)                       # (I, 4H)
    wh = _reorder_gates(params["w_hh"].T)                       # (H, 4H)
    b_gate = _reorder_gates(params["b_ih"] + params["b_hh"])    # (4H,)
    wfc_t = params["w_fc"].T                                    # (H, I)
    bfc = params["b_fc"]                                        # (I,)

    vmem = pl.BlockSpec(memory_space=pltpu.MemorySpace.VMEM)
    b_full = jnp.broadcast_to(b_gate[None, :], (B, 4 * H))      # hoisted broadcast

    if L == 1:
        # Fold FC head into the recurrence (valid because x_{t+1} = fc(h_{t+1})).
        w_rec = _reorder_gates(wfc_t @ params["w_ih"].T + params["w_hh"].T)   # (H, 4H)
        b_rec = _reorder_gates(params["b_ih"] + params["b_hh"]
                               + bfc @ params["w_ih"].T)                      # (4H,)
        w_rec_ext = jnp.concatenate([w_rec, wfc_t[:, -1:]], axis=1)           # (H, 4H+1)
        b_rec_ext = jnp.concatenate([b_rec, bfc[-1:]], axis=0)                # (4H+1,)
        brec_full = jnp.broadcast_to(b_rec_ext[None, :], (B, 4 * H + 1))

        kernel = functools.partial(_decoder_kernel_l1, seq_len=seq_len, H=H)
        out = pl.pallas_call(
            kernel,
            out_shape=jax.ShapeDtypeStruct((B, seq_len), jnp.float32),
            in_specs=[vmem] * 8,
            out_specs=vmem,
        )(xt[:, 0, :], hidden, cell, wx, wh, b_full, w_rec_ext, brec_full)
    else:
        bfc_full = jnp.broadcast_to(bfc[None, :], (B, I))
        kernel = functools.partial(_decoder_kernel_general,
                                   seq_len=seq_len, L=L, H=H)
        out = pl.pallas_call(
            kernel,
            out_shape=jax.ShapeDtypeStruct((B, seq_len * L), jnp.float32),
            in_specs=[vmem] * 8,
            out_specs=vmem,
        )(xt, hidden, cell, wx, wh, b_full, wfc_t, bfc_full)

    # (B, seq_len*L) -> (B, seq_len*L, 1), matching torch.cat(outputs, dim=1).
    return out[:, :, None]


def decoder_reference(xt, hidden, cell, params, seq_len):
    """Pure-JAX reference mirroring the PyTorch forward exactly."""
    h, c = hidden, cell
    B, L, I = xt.shape
    H = hidden.shape[-1]
    w_ih, w_hh = params["w_ih"], params["w_hh"]
    b = params["b_ih"] + params["b_hh"]
    outs = []
    for _ in range(seq_len):
        hs = []
        for l in range(L):
            x = xt[:, l, :]
            gates = x @ w_ih.T + h @ w_hh.T + b
            i_g = jax.nn.sigmoid(gates[:, :H])
            f_g = jax.nn.sigmoid(gates[:, H:2 * H])
            g_g = jnp.tanh(gates[:, 2 * H:3 * H])
            o_g = jax.nn.sigmoid(gates[:, 3 * H:])
            c = f_g * c + i_g * g_g
            h = o_g * jnp.tanh(c)
            hs.append(h)
        lstm_out = jnp.stack(hs, axis=1)                       # (B, L, H)
        out = lstm_out @ params["w_fc"].T + params["b_fc"]     # (B, L, I)
        outs.append(out[:, :, -1:])
        xt = out
    return jnp.concatenate(outs, axis=1)                       # (B, seq_len*L, 1)


def init_params(key, input_size, hidden_size):
    ks = jax.random.split(key, 6)
    s = 1.0 / jnp.sqrt(hidden_size)
    return {
        "w_ih": jax.random.uniform(ks[0], (4 * hidden_size, input_size),
                                   jnp.float32, -s, s),
        "w_hh": jax.random.uniform(ks[1], (4 * hidden_size, hidden_size),
                                   jnp.float32, -s, s),
        "b_ih": jax.random.uniform(ks[2], (4 * hidden_size,), jnp.float32, -s, s),
        "b_hh": jax.random.uniform(ks[3], (4 * hidden_size,), jnp.float32, -s, s),
        "w_fc": jax.random.uniform(ks[4], (input_size, hidden_size),
                                   jnp.float32, -s, s),
        "b_fc": jax.random.uniform(ks[5], (input_size,), jnp.float32, -s, s),
    }


if __name__ == "__main__":
    B, INPUT_SIZE, HIDDEN_SIZE, SEQ_LEN = 2, 4, 32, 8

    key = jax.random.PRNGKey(0)
    k_x, k_h, k_c, k_p = jax.random.split(key, 4)
    hidden = jax.random.normal(k_h, (B, HIDDEN_SIZE), jnp.float32)
    cell = jax.random.normal(k_c, (B, HIDDEN_SIZE), jnp.float32)
    params = init_params(k_p, INPUT_SIZE, HIDDEN_SIZE)

    # --- L == 1 folded fast path (the standard Decoder config) -----------
    xt1 = jax.random.normal(k_x, (B, 1, INPUT_SIZE), jnp.float32)
    run1 = jax.jit(functools.partial(decoder_forward, seq_len=SEQ_LEN))
    out1 = jax.block_until_ready(run1(xt1, hidden, cell, params))
    ref1 = decoder_reference(xt1, hidden, cell, params, SEQ_LEN)
    assert out1.shape == (B, SEQ_LEN, 1), out1.shape
    assert jnp.allclose(out1, ref1, rtol=1e-4, atol=1e-5), (
        f"L=1 max abs err {jnp.max(jnp.abs(out1 - ref1))}")

    # --- general path (L > 1) ---------------------------------------------
    L2, SEQ2 = 3, 4
    xt2 = jax.random.normal(k_x, (B, L2, INPUT_SIZE), jnp.float32)
    run2 = jax.jit(functools.partial(decoder_forward, seq_len=SEQ2))
    out2 = jax.block_until_ready(run2(xt2, hidden, cell, params))
    ref2 = decoder_reference(xt2, hidden, cell, params, SEQ2)
    assert out2.shape == (B, SEQ2 * L2, 1), out2.shape
    assert jnp.allclose(out2, ref2, rtol=1e-4, atol=1e-5), (
        f"L=3 max abs err {jnp.max(jnp.abs(out2 - ref2))}")

    print("KERNEL_OK")
</pallas_src>

<mosaic_0001>
module attributes {stable_mosaic.version = 11 : i64} {
  func.func @_decoder_kernel_l1(%arg0: memref<2x4xf32, #tpu.memory_space<vmem>>, %arg1: memref<2x32xf32, #tpu.memory_space<vmem>>, %arg2: memref<2x32xf32, #tpu.memory_space<vmem>>, %arg3: memref<4x128xf32, #tpu.memory_space<vmem>>, %arg4: memref<32x128xf32, #tpu.memory_space<vmem>>, %arg5: memref<2x128xf32, #tpu.memory_space<vmem>>, %arg6: memref<32x129xf32, #tpu.memory_space<vmem>>, %arg7: memref<2x129xf32, #tpu.memory_space<vmem>>, %arg8: memref<2x8xf32, #tpu.memory_space<vmem>>) attributes {dimension_semantics = [], scalar_prefetch = 0 : i64, scratch_operands = 0 : i64, tpu.core_type = #tpu.core_type<tc>} {
    %c0 = arith.constant 0 : index
    %c0_0 = arith.constant 0 : index
    %0 = vector.load %arg1[%c0, %c0_0] : memref<2x32xf32, #tpu.memory_space<vmem>>, vector<2x32xf32>
    %c0_1 = arith.constant 0 : index
    %c0_2 = arith.constant 0 : index
    %1 = vector.load %arg2[%c0_1, %c0_2] : memref<2x32xf32, #tpu.memory_space<vmem>>, vector<2x32xf32>
    %c0_3 = arith.constant 0 : index
    %c0_4 = arith.constant 0 : index
    %2 = vector.load %arg0[%c0_3, %c0_4] : memref<2x4xf32, #tpu.memory_space<vmem>>, vector<2x4xf32>
    %c0_5 = arith.constant 0 : index
    %c0_6 = arith.constant 0 : index
    %3 = vector.load %arg3[%c0_5, %c0_6] : memref<4x128xf32, #tpu.memory_space<vmem>>, vector<4x128xf32>
    %cst = arith.constant dense<0.000000e+00> : vector<2x128xf32>
    %4 = tpu.matmul %2, %3, %cst {dimension_numbers = #tpu.dot_dimension_numbers<[1], [0], [0], [1], [0, 0, 1, 1], [], []>} : vector<2x4xf32>, vector<4x128xf32>, vector<2x128xf32> -> vector<2x128xf32>
    %c0_7 = arith.constant 0 : index
    %c0_8 = arith.constant 0 : index
    %5 = vector.load %arg4[%c0_7, %c0_8] : memref<32x128xf32, #tpu.memory_space<vmem>>, vector<32x128xf32>
    %cst_9 = arith.constant dense<0.000000e+00> : vector<2x128xf32>
    %6 = tpu.matmul %0, %5, %cst_9 {dimension_numbers = #tpu.dot_dimension_numbers<[1], [0], [0], [1], [0, 0, 1, 1], [], []>} : vector<2x32xf32>, vector<32x128xf32>, vector<2x128xf32> -> vector<2x128xf32>
    %7 = arith.addf %4, %6 : vector<2x128xf32>
    %c0_10 = arith.constant 0 : index
    %c0_11 = arith.constant 0 : index
    %8 = vector.load %arg5[%c0_10, %c0_11] : memref<2x128xf32, #tpu.memory_space<vmem>>, vector<2x128xf32>
    %9 = arith.addf %7, %8 : vector<2x128xf32>
    %10 = vector.extract_strided_slice %9 {offsets = [0, 0], sizes = [2, 96], strides = [1, 1]} : vector<2x128xf32> to vector<2x96xf32>
    %11 = arith.negf %10 : vector<2x96xf32>
    %12 = math.exp %11 : vector<2x96xf32>
    %cst_12 = arith.constant 1.000000e+00 : f32
    %13 = vector.broadcast %cst_12 : f32 to vector<2x96xf32>
    %14 = arith.addf %13, %12 : vector<2x96xf32>
    %15 = arith.divf %13, %14 : vector<2x96xf32>
    %16 = vector.extract_strided_slice %9 {offsets = [0, 96], sizes = [2, 32], strides = [1, 1]} : vector<2x128xf32> to vector<2x32xf32>
    %17 = math.tanh %16 : vector<2x32xf32>
    %18 = vector.extract_strided_slice %15 {offsets = [0, 32], sizes = [2, 32], strides = [1, 1]} : vector<2x96xf32> to vector<2x32xf32>
    %19 = arith.mulf %18, %1 : vector<2x32xf32>
    %20 = vector.extract_strided_slice %15 {offsets = [0, 0], sizes = [2, 32], strides = [1, 1]} : vector<2x96xf32> to vector<2x32xf32>
    %21 = arith.mulf %20, %17 : vector<2x32xf32>
    %22 = arith.addf %19, %21 : vector<2x32xf32>
    %23 = vector.extract_strided_slice %15 {offsets = [0, 64], sizes = [2, 32], strides = [1, 1]} : vector<2x96xf32> to vector<2x32xf32>
    %24 = math.tanh %22 : vector<2x32xf32>
    %25 = arith.mulf %23, %24 : vector<2x32xf32>
    %c0_13 = arith.constant 0 : index
    %c0_14 = arith.constant 0 : index
    %26 = vector.load %arg6[%c0_13, %c0_14] : memref<32x129xf32, #tpu.memory_space<vmem>>, vector<32x129xf32>
    %c0_15 = arith.constant 0 : index
    %c0_16 = arith.constant 0 : index
    %27 = vector.load %arg7[%c0_15, %c0_16] : memref<2x129xf32, #tpu.memory_space<vmem>>, vector<2x129xf32>
    %cst_17 = arith.constant dense<0.000000e+00> : vector<2x129xf32>
    %28 = tpu.matmul %25, %26, %cst_17 {dimension_numbers = #tpu.dot_dimension_numbers<[1], [0], [0], [1], [0, 0, 1, 1], [], []>} : vector<2x32xf32>, vector<32x129xf32>, vector<2x129xf32> -> vector<2x129xf32>
    %29 = arith.addf %28, %27 : vector<2x129xf32>
    %30 = vector.extract_strided_slice %29 {offsets = [0, 128], sizes = [2, 1], strides = [1, 1]} : vector<2x129xf32> to vector<2x1xf32>
    %31 = vector.extract_strided_slice %29 {offsets = [0, 0], sizes = [2, 128], strides = [1, 1]} : vector<2x129xf32> to vector<2x128xf32>
    %32 = vector.extract_strided_slice %31 {offsets = [0, 0], sizes = [2, 96], strides = [1, 1]} : vector<2x128xf32> to vector<2x96xf32>
    %33 = arith.negf %32 : vector<2x96xf32>
    %34 = math.exp %33 : vector<2x96xf32>
    %cst_18 = arith.constant 1.000000e+00 : f32
    %35 = vector.broadcast %cst_18 : f32 to vector<2x96xf32>
    %36 = arith.addf %35, %34 : vector<2x96xf32>
    %37 = arith.divf %35, %36 : vector<2x96xf32>
    %38 = vector.extract_strided_slice %31 {offsets = [0, 96], sizes = [2, 32], strides = [1, 1]} : vector<2x128xf32> to vector<2x32xf32>
    %39 = math.tanh %38 : vector<2x32xf32>
    %40 = vector.extract_strided_slice %37 {offsets = [0, 32], sizes = [2, 32], strides = [1, 1]} : vector<2x96xf32> to vector<2x32xf32>
    %41 = arith.mulf %40, %22 : vector<2x32xf32>
    %42 = vector.extract_strided_slice %37 {offsets = [0, 0], sizes = [2, 32], strides = [1, 1]} : vector<2x96xf32> to vector<2x32xf32>
    %43 = arith.mulf %42, %39 : vector<2x32xf32>
    %44 = arith.addf %41, %43 : vector<2x32xf32>
    %45 = vector.extract_strided_slice %37 {offsets = [0, 64], sizes = [2, 32], strides = [1, 1]} : vector<2x96xf32> to vector<2x32xf32>
    %46 = math.tanh %44 : vector<2x32xf32>
    %47 = arith.mulf %45, %46 : vector<2x32xf32>
    %cst_19 = arith.constant dense<0.000000e+00> : vector<2x129xf32>
    %48 = tpu.matmul %47, %26, %cst_19 {dimension_numbers = #tpu.dot_dimension_numbers<[1], [0], [0], [1], [0, 0, 1, 1], [], []>} : vector<2x32xf32>, vector<32x129xf32>, vector<2x129xf32> -> vector<2x129xf32>
    %49 = arith.addf %48, %27 : vector<2x129xf32>
    %50 = vector.extract_strided_slice %49 {offsets = [0, 128], sizes = [2, 1], strides = [1, 1]} : vector<2x129xf32> to vector<2x1xf32>
    %51 = vector.extract_strided_slice %49 {offsets = [0, 0], sizes = [2, 128], strides = [1, 1]} : vector<2x129xf32> to vector<2x128xf32>
    %52 = vector.extract_strided_slice %51 {offsets = [0, 0], sizes = [2, 96], strides = [1, 1]} : vector<2x128xf32> to vector<2x96xf32>
    %53 = arith.negf %52 : vector<2x96xf32>
    %54 = math.exp %53 : vector<2x96xf32>
    %cst_20 = arith.constant 1.000000e+00 : f32
    %55 = vector.broadcast %cst_20 : f32 to vector<2x96xf32>
    %56 = arith.addf %55, %54 : vector<2x96xf32>
    %57 = arith.divf %55, %56 : vector<2x96xf32>
    %58 = vector.extract_strided_slice %51 {offsets = [0, 96], sizes = [2, 32], strides = [1, 1]} : vector<2x128xf32> to vector<2x32xf32>
    %59 = math.tanh %58 : vector<2x32xf32>
    %60 = vector.extract_strided_slice %57 {offsets = [0, 32], sizes = [2, 32], strides = [1, 1]} : vector<2x96xf32> to vector<2x32xf32>
    %61 = arith.mulf %60, %44 : vector<2x32xf32>
    %62 = vector.extract_strided_slice %57 {offsets = [0, 0], sizes = [2, 32], strides = [1, 1]} : vector<2x96xf32> to vector<2x32xf32>
    %63 = arith.mulf %62, %59 : vector<2x32xf32>
    %64 = arith.addf %61, %63 : vector<2x32xf32>
    %65 = vector.extract_strided_slice %57 {offsets = [0, 64], sizes = [2, 32], strides = [1, 1]} : vector<2x96xf32> to vector<2x32xf32>
    %66 = math.tanh %64 : vector<2x32xf32>
    %67 = arith.mulf %65, %66 : vector<2x32xf32>
    %cst_21 = arith.constant dense<0.000000e+00> : vector<2x129xf32>
    %68 = tpu.matmul %67, %26, %cst_21 {dimension_numbers = #tpu.dot_dimension_numbers<[1], [0], [0], [1], [0, 0, 1, 1], [], []>} : vector<2x32xf32>, vector<32x129xf32>, vector<2x129xf32> -> vector<2x129xf32>
    %69 = arith.addf %68, %27 : vector<2x129xf32>
    %70 = vector.extract_strided_slice %69 {offsets = [0, 128], sizes = [2, 1], strides = [1, 1]} : vector<2x129xf32> to vector<2x1xf32>
    %71 = vector.extract_strided_slice %69 {offsets = [0, 0], sizes = [2, 128], strides = [1, 1]} : vector<2x129xf32> to vector<2x128xf32>
    %72 = vector.extract_strided_slice %71 {offsets = [0, 0], sizes = [2, 96], strides = [1, 1]} : vector<2x128xf32> to vector<2x96xf32>
    %73 = arith.negf %72 : vector<2x96xf32>
    %74 = math.exp %73 : vector<2x96xf32>
    %cst_22 = arith.constant 1.000000e+00 : f32
    %75 = vector.broadcast %cst_22 : f32 to vector<2x96xf32>
    %76 = arith.addf %75, %74 : vector<2x96xf32>
    %77 = arith.divf %75, %76 : vector<2x96xf32>
    %78 = vector.extract_strided_slice %71 {offsets = [0, 96], sizes = [2, 32], strides = [1, 1]} : vector<2x128xf32> to vector<2x32xf32>
    %79 = math.tanh %78 : vector<2x32xf32>
    %80 = vector.extract_strided_slice %77 {offsets = [0, 32], sizes = [2, 32], strides = [1, 1]} : vector<2x96xf32> to vector<2x32xf32>
    %81 = arith.mulf %80, %64 : vector<2x32xf32>
    %82 = vector.extract_strided_slice %77 {offsets = [0, 0], sizes = [2, 32], strides = [1, 1]} : vector<2x96xf32> to vector<2x32xf32>
    %83 = arith.mulf %82, %79 : vector<2x32xf32>
    %84 = arith.addf %81, %83 : vector<2x32xf32>
    %85 = vector.extract_strided_slice %77 {offsets = [0, 64], sizes = [2, 32], strides = [1, 1]} : vector<2x96xf32> to vector<2x32xf32>
    %86 = math.tanh %84 : vector<2x32xf32>
    %87 = arith.mulf %85, %86 : vector<2x32xf32>
    %cst_23 = arith.constant dense<0.000000e+00> : vector<2x129xf32>
    %88 = tpu.matmul %87, %26, %cst_23 {dimension_numbers = #tpu.dot_dimension_numbers<[1], [0], [0], [1], [0, 0, 1, 1], [], []>} : vector<2x32xf32>, vector<32x129xf32>, vector<2x129xf32> -> vector<2x129xf32>
    %89 = arith.addf %88, %27 : vector<2x129xf32>
    %90 = vector.extract_strided_slice %89 {offsets = [0, 128], sizes = [2, 1], strides = [1, 1]} : vector<2x129xf32> to vector<2x1xf32>
    %91 = vector.extract_strided_slice %89 {offsets = [0, 0], sizes = [2, 128], strides = [1, 1]} : vector<2x129xf32> to vector<2x128xf32>
    %92 = vector.extract_strided_slice %91 {offsets = [0, 0], sizes = [2, 96], strides = [1, 1]} : vector<2x128xf32> to vector<2x96xf32>
    %93 = arith.negf %92 : vector<2x96xf32>
    %94 = math.exp %93 : vector<2x96xf32>
    %cst_24 = arith.constant 1.000000e+00 : f32
    %95 = vector.broadcast %cst_24 : f32 to vector<2x96xf32>
    %96 = arith.addf %95, %94 : vector<2x96xf32>
    %97 = arith.divf %95, %96 : vector<2x96xf32>
    %98 = vector.extract_strided_slice %91 {offsets = [0, 96], sizes = [2, 32], strides = [1, 1]} : vector<2x128xf32> to vector<2x32xf32>
    %99 = math.tanh %98 : vector<2x32xf32>
    %100 = vector.extract_strided_slice %97 {offsets = [0, 32], sizes = [2, 32], strides = [1, 1]} : vector<2x96xf32> to vector<2x32xf32>
    %101 = arith.mulf %100, %84 : vector<2x32xf32>
    %102 = vector.extract_strided_slice %97 {offsets = [0, 0], sizes = [2, 32], strides = [1, 1]} : vector<2x96xf32> to vector<2x32xf32>
    %103 = arith.mulf %102, %99 : vector<2x32xf32>
    %104 = arith.addf %101, %103 : vector<2x32xf32>
    %105 = vector.extract_strided_slice %97 {offsets = [0, 64], sizes = [2, 32], strides = [1, 1]} : vector<2x96xf32> to vector<2x32xf32>
    %106 = math.tanh %104 : vector<2x32xf32>
    %107 = arith.mulf %105, %106 : vector<2x32xf32>
    %cst_25 = arith.constant dense<0.000000e+00> : vector<2x129xf32>
    %108 = tpu.matmul %107, %26, %cst_25 {dimension_numbers = #tpu.dot_dimension_numbers<[1], [0], [0], [1], [0, 0, 1, 1], [], []>} : vector<2x32xf32>, vector<32x129xf32>, vector<2x129xf32> -> vector<2x129xf32>
    %109 = arith.addf %108, %27 : vector<2x129xf32>
    %110 = vector.extract_strided_slice %109 {offsets = [0, 128], sizes = [2, 1], strides = [1, 1]} : vector<2x129xf32> to vector<2x1xf32>
    %111 = vector.extract_strided_slice %109 {offsets = [0, 0], sizes = [2, 128], strides = [1, 1]} : vector<2x129xf32> to vector<2x128xf32>
    %112 = vector.extract_strided_slice %111 {offsets = [0, 0], sizes = [2, 96], strides = [1, 1]} : vector<2x128xf32> to vector<2x96xf32>
    %113 = arith.negf %112 : vector<2x96xf32>
    %114 = math.exp %113 : vector<2x96xf32>
    %cst_26 = arith.constant 1.000000e+00 : f32
    %115 = vector.broadcast %cst_26 : f32 to vector<2x96xf32>
    %116 = arith.addf %115, %114 : vector<2x96xf32>
    %117 = arith.divf %115, %116 : vector<2x96xf32>
    %118 = vector.extract_strided_slice %111 {offsets = [0, 96], sizes = [2, 32], strides = [1, 1]} : vector<2x128xf32> to vector<2x32xf32>
    %119 = math.tanh %118 : vector<2x32xf32>
    %120 = vector.extract_strided_slice %117 {offsets = [0, 32], sizes = [2, 32], strides = [1, 1]} : vector<2x96xf32> to vector<2x32xf32>
    %121 = arith.mulf %120, %104 : vector<2x32xf32>
    %122 = vector.extract_strided_slice %117 {offsets = [0, 0], sizes = [2, 32], strides = [1, 1]} : vector<2x96xf32> to vector<2x32xf32>
    %123 = arith.mulf %122, %119 : vector<2x32xf32>
    %124 = arith.addf %121, %123 : vector<2x32xf32>
    %125 = vector.extract_strided_slice %117 {offsets = [0, 64], sizes = [2, 32], strides = [1, 1]} : vector<2x96xf32> to vector<2x32xf32>
    %126 = math.tanh %124 : vector<2x32xf32>
    %127 = arith.mulf %125, %126 : vector<2x32xf32>
    %cst_27 = arith.constant dense<0.000000e+00> : vector<2x129xf32>
    %128 = tpu.matmul %127, %26, %cst_27 {dimension_numbers = #tpu.dot_dimension_numbers<[1], [0], [0], [1], [0, 0, 1, 1], [], []>} : vector<2x32xf32>, vector<32x129xf32>, vector<2x129xf32> -> vector<2x129xf32>
    %129 = arith.addf %128, %27 : vector<2x129xf32>
    %130 = vector.extract_strided_slice %129 {offsets = [0, 128], sizes = [2, 1], strides = [1, 1]} : vector<2x129xf32> to vector<2x1xf32>
    %131 = vector.extract_strided_slice %129 {offsets = [0, 0], sizes = [2, 128], strides = [1, 1]} : vector<2x129xf32> to vector<2x128xf32>
    %132 = vector.extract_strided_slice %131 {offsets = [0, 0], sizes = [2, 96], strides = [1, 1]} : vector<2x128xf32> to vector<2x96xf32>
    %133 = arith.negf %132 : vector<2x96xf32>
    %134 = math.exp %133 : vector<2x96xf32>
    %cst_28 = arith.constant 1.000000e+00 : f32
    %135 = vector.broadcast %cst_28 : f32 to vector<2x96xf32>
    %136 = arith.addf %135, %134 : vector<2x96xf32>
    %137 = arith.divf %135, %136 : vector<2x96xf32>
    %138 = vector.extract_strided_slice %131 {offsets = [0, 96], sizes = [2, 32], strides = [1, 1]} : vector<2x128xf32> to vector<2x32xf32>
    %139 = math.tanh %138 : vector<2x32xf32>
    %140 = vector.extract_strided_slice %137 {offsets = [0, 32], sizes = [2, 32], strides = [1, 1]} : vector<2x96xf32> to vector<2x32xf32>
    %141 = arith.mulf %140, %124 : vector<2x32xf32>
    %142 = vector.extract_strided_slice %137 {offsets = [0, 0], sizes = [2, 32], strides = [1, 1]} : vector<2x96xf32> to vector<2x32xf32>
    %143 = arith.mulf %142, %139 : vector<2x32xf32>
    %144 = arith.addf %141, %143 : vector<2x32xf32>
    %145 = vector.extract_strided_slice %137 {offsets = [0, 64], sizes = [2, 32], strides = [1, 1]} : vector<2x96xf32> to vector<2x32xf32>
    %146 = math.tanh %144 : vector<2x32xf32>
    %147 = arith.mulf %145, %146 : vector<2x32xf32>
    %cst_29 = arith.constant dense<0.000000e+00> : vector<2x129xf32>
    %148 = tpu.matmul %147, %26, %cst_29 {dimension_numbers = #tpu.dot_dimension_numbers<[1], [0], [0], [1], [0, 0, 1, 1], [], []>} : vector<2x32xf32>, vector<32x129xf32>, vector<2x129xf32> -> vector<2x129xf32>
    %149 = arith.addf %148, %27 : vector<2x129xf32>
    %150 = vector.extract_strided_slice %149 {offsets = [0, 128], sizes = [2, 1], strides = [1, 1]} : vector<2x129xf32> to vector<2x1xf32>
    %151 = vector.extract_strided_slice %149 {offsets = [0, 0], sizes = [2, 128], strides = [1, 1]} : vector<2x129xf32> to vector<2x128xf32>
    %152 = vector.extract_strided_slice %151 {offsets = [0, 0], sizes = [2, 96], strides = [1, 1]} : vector<2x128xf32> to vector<2x96xf32>
    %153 = arith.negf %152 : vector<2x96xf32>
    %154 = math.exp %153 : vector<2x96xf32>
    %cst_30 = arith.constant 1.000000e+00 : f32
    %155 = vector.broadcast %cst_30 : f32 to vector<2x96xf32>
    %156 = arith.addf %155, %154 : vector<2x96xf32>
    %157 = arith.divf %155, %156 : vector<2x96xf32>
    %158 = vector.extract_strided_slice %151 {offsets = [0, 96], sizes = [2, 32], strides = [1, 1]} : vector<2x128xf32> to vector<2x32xf32>
    %159 = math.tanh %158 : vector<2x32xf32>
    %160 = vector.extract_strided_slice %157 {offsets = [0, 32], sizes = [2, 32], strides = [1, 1]} : vector<2x96xf32> to vector<2x32xf32>
    %161 = arith.mulf %160, %144 : vector<2x32xf32>
    %162 = vector.extract_strided_slice %157 {offsets = [0, 0], sizes = [2, 32], strides = [1, 1]} : vector<2x96xf32> to vector<2x32xf32>
    %163 = arith.mulf %162, %159 : vector<2x32xf32>
    %164 = arith.addf %161, %163 : vector<2x32xf32>
    %165 = vector.extract_strided_slice %157 {offsets = [0, 64], sizes = [2, 32], strides = [1, 1]} : vector<2x96xf32> to vector<2x32xf32>
    %166 = math.tanh %164 : vector<2x32xf32>
    %167 = arith.mulf %165, %166 : vector<2x32xf32>
    %168 = vector.extract_strided_slice %26 {offsets = [0, 128], sizes = [32, 1], strides = [1, 1]} : vector<32x129xf32> to vector<32x1xf32>
    %cst_31 = arith.constant dense<0.000000e+00> : vector<2x1xf32>
    %169 = tpu.matmul %167, %168, %cst_31 {dimension_numbers = #tpu.dot_dimension_numbers<[1], [0], [0], [1], [0, 0, 1, 1], [], []>} : vector<2x32xf32>, vector<32x1xf32>, vector<2x1xf32> -> vector<2x1xf32>
    %170 = vector.extract_strided_slice %27 {offsets = [0, 128], sizes = [2, 1], strides = [1, 1]} : vector<2x129xf32> to vector<2x1xf32>
    %171 = arith.addf %169, %170 : vector<2x1xf32>
    %172 = tpu.concatenate %30, %50, %70, %90, %110, %130, %150, %171 in 1 : vector<2x1xf32>, vector<2x1xf32>, vector<2x1xf32>, vector<2x1xf32>, vector<2x1xf32>, vector<2x1xf32>, vector<2x1xf32>, vector<2x1xf32> -> vector<2x8xf32>
    %c0_32 = arith.constant 0 : index
    %c0_33 = arith.constant 0 : index
    %173 = vector.load %arg8[%c0_32, %c0_33] : memref<2x8xf32, #tpu.memory_space<vmem>>, vector<2x8xf32>
    tpu.vector_store %arg8[%c0_32, %c0_33], %172 {strides = array<i32>} : memref<2x8xf32, #tpu.memory_space<vmem>>, vector<2x8xf32>,
    return
  }
}

</mosaic_0001>

<bundles_post_ra>
// kernel: decoder_forward.1
= control target key start
LH: loop header
LB: loop body
LE: loop exit
PB: predicated region body
PF: predicated region fallthrough
CT: control target
= control target key end

     0   :  { %vm116_vm0 = vcmask 1043456   ;;  %v1300_v3 = vmov 0.0|0.0   ;;  %v1301_v6 = vmov 0.0   ;;  %vm1302_vm1 = vmmov 0   ;;  %s1550_s0 = inlined_call_operand.vmem [shape: f32[2,4], index: 0, kind: input, shape index: {}]   ;;  %s1551_s1 = inlined_call_operand.vmem [shape: f32[2,32], index: 1, kind: input, shape index: {}]   ;;  %s1552_s2 = inlined_call_operand.vmem [shape: f32[2,32], index: 2, kind: input, shape index: {}]   ;;  %s1553_s3 = inlined_call_operand.vmem [shape: f32[4,128], index: 3, kind: input, shape index: {}]   ;;  %s1554_s4 = inlined_call_operand.vmem [shape: f32[32,128], index: 4, kind: input, shape index: {}]   ;;  %s1555_s5 = inlined_call_operand.vmem [shape: f32[2,128], index: 5, kind: input, shape index: {}]   ;;  %s1556_s6 = inlined_call_operand.vmem [shape: f32[32,129], index: 6, kind: input, shape index: {}]   ;;  %s1557_s7 = inlined_call_operand.vmem [shape: f32[2,129], index: 7, kind: input, shape index: {}]   ;;  %s1558_s8 = inlined_call_operand.hbm [shape: f32[2,8], index: 8, kind: output, shape index: {}]  }
   0x1   :  { %v34_v0 = vld [vmem:[%s1554_s4] sm:$0xff]  ;;  %v35_v1 = vld [vmem:[%s1554_s4 + $0x8] sm:$0xff]  ;;  %v36_v2 = vld [vmem:[%s1554_s4 + $0x10] sm:$0xff]  ;;  %1131 = vmatprep.subr.bf16.mxu0 %v1300_v3  ;;  %1115 = vmatprep.subr.mxu1 %v1301_v6  ;;  %vm112_vm2 = vcmask 31744  }
   0x2   :  { %v1132_v4 = vpack.c.bf16 %v35_v1, %v34_v0  ;;  %v37_v5 = vld [vmem:[%s1554_s4 + $0x18] sm:$0xff]  ;;  %v33_v7 = vld [vmem:[%s1553_s3] sm:$0xf]  ;;  %1117 = vmatprep.mubr.msk.f32.mxu1 %vm1302_vm1, %v1301_v6 }
   0x3   :  { %v32_v8 = vld [vmem:[%s1550_s0] sm:$0x3]  ;;  %1116 = vmatpush3.msk.msra.mxu1 %vm116_vm0, %v33_v7 }
   0x4   :  { %13 = vsyncpa [#allocation3], 0  ;;  %1133 = vmatpush3.bf16.msra.mxu0 %v1132_v4  ;;  %v1135_v9 = vpack.c.bf16 %v37_v5, %v36_v2  ;;  %1112 = vmatprep.mubr.msk.f32.mxu0 %vm1302_vm1, %v1301_v6  ;;  %v30_v10 = vld [vmem:[%s1551_s1] sm:$0x3]  ;;  %vm38_vm3 = vcmask 261120   ;;  %s1303_s18 = smov 32  }
   0x5   :  { %1134 = vmatprep.subr.bf16.mxu0 %v1300_v3  ;;  %1118 = vmatmul.mubr.msk.f32.vlgmr.msra.gmra.mrb[0].mxu1 %vm112_vm2, %v32_v8  ;;  %v190_v14 = vld [vmem:[%s1555_s5] sm:$0x3]  ;;  %v221_v30 = vld [vmem:[%s1556_s6 + $0x8] sm:$0xff]  ;;  %v223_v31 = vld [vmem:[%s1556_s6 + $0x18] sm:$0xff]  ;;  %s1306_s14 = smov 3   ;;  %s1307_s15 = smov 5  }
   0x6   :  { %309 = vmatprep.mubr.f32.mxu1 %v1301_v6  ;;  %v31_v19 = vld [vmem:[%s1552_s2] sm:$0x3]  ;;  %v1408_v33 = vpack.c.bf16 %v223_v31, %v221_v30  ;;  %v222_v34 = vld [vmem:[%s1556_s6 + $0x10] sm:$0xff]  ;;  %v225_v35 = vld [vmem:[%s1556_s6 + $0x28] sm:$0xff]  ;;  %s1308_s16 = smov 2   ;;  %s1309_s0 = smov 4  }
   0x7   :  { %v220_v32 = vld [vmem:[%s1556_s6] sm:$0xff]  ;;  %v227_v36 = vld [vmem:[%s1556_s6 + $0x38] sm:$0xff]  ;;  %v226_v40 = vld [vmem:[%s1556_s6 + $0x30] sm:$0xff]  ;;  %s1310_s3 = smov 6   ;;  %s1311_s4 = smov 7   ;;  %vm1043_vm4 = vcmask 7168  }
   0x8   :  { %1136 = vmatpush3.bf16.msra.mxu0 %v1135_v9  ;;  %v1419_v37 = vpack.c.bf16 %v222_v34, %v220_v32  ;;  %v1421_v38 = vpack.c.bf16 %v227_v36, %v225_v35  ;;  %v224_v39 = vld [vmem:[%s1556_s6 + $0x20] sm:$0xff]  ;;  %1138 = vmatprep.subr.bf16.mxu1 %v1408_v33  ;;  %s1304_s6 = smov 64   ;;  %vm1045_vm5 = vcmask 15360   ;;  %vm1047_vm6 = vcmask 23552   ;;  %s1312_s17 = smov [#allocation2]  }
   0x9   :  { %1146 = vmatprep.subr.bf16.mxu0 %v1408_v33  ;;  %v1432_v41 = vpack.c.bf16 %v226_v40, %v224_v39  ;;  %v1452_v46 = vld.sshfl [vmem:[%s1557_s7] sm:$0x33 pattern:$0x76325410]  ;;  %s1305_s7 = smov 1   ;;  %vm1050_vm7 = vcmask 39936  }
   0xa   :  { %1140 = vmatpush1.bf16.msra.mxu1 %v1419_v37  ;;  %vm1052_vm8 = vcmask 48128   ;;  %vm1054_vm9 = vcmask 56320   ;;  %vm1056_vm10 = vcmask 58368  }
   0xb   :  { %1113 = vmatmul.mubr.msk.f32.vlgmr.msra.gmra.mrb[0].mxu0 %vm38_vm3, %v30_v10  ;;  %1142 = vmatprep.subr.bf16.mxu1 %v1421_v38 }
   0xc   :  { %409 = vmatprep.mubr.f32.mxu0 %v1301_v6  ;;  %1148 = vmatpush1.bf16.msra.mxu0 %v1419_v37 }
   0xd   :  { %1150 = vmatprep.subr.bf16.mxu0 %v1421_v38 }
   0xe   :  { %1144 = vmatpush1.bf16.msra.mxu1 %v1432_v41 }
   0xf   :  { %1154 = vmatprep.subr.bf16.mxu1 %v1408_v33 }
  0x10   :  { %1152 = vmatpush1.bf16.msra.mxu0 %v1432_v41 }
  0x11   :  { %1162 = vmatprep.subr.bf16.mxu0 %v1408_v33 }
  0xd8   :  { %v186_v11 = vpop.f32.mrb[0].mxu1 }
  0xd9   :  { %v1119_v12 = vpop.f32.mrb[1].mxu1 }
  0xde   :  { %v108_v13 = vpop.f32.mrb[0].mxu0 }
  0xdf   :  { %v187_v15 = vadd.f32 %v186_v11, %v108_v13  ;;  %v1114_v16 = vpop.f32.mrb[1].mxu0 }
  0xe1   :  { %v191_v17 = vadd.f32 %v190_v14, %v187_v15 }
  0xe3   :  { %1212 = vtanh.f32 %v191_v17  ;;  %v1075_v20 = vmul.f32 -1.442695, %v191_v17 }
  0xe5   :  { %1214 = vpow2.f32 %v1075_v20 }
  0xed   :  { %v1213_v18 = vpop.eup %1212 }
  0xee   :  { %205 = vrot.lane.b32.xlu0 %v1213_v18, %s1303_s18 }
  0xef   :  { %v1215_v21 = vpop.eup %1214 }
  0xf0   :  { %v195_v22 = vadd.f32 1.0, %v1215_v21 }
  0xf2   :  { %200 = vrot.lane.b32.xlu0 %v31_v19, %s1303_s18  ;;  %1216 = vrcp.f32 %v195_v22 }
  0xfc   :  { %v1217_v23 = vpop.eup %1216 }
 0x160   :  { %v206_v24 = vpop.permute.xlu0 %205 }
 0x161   :  { %v208_v25 = vmul.f32 %v1217_v23, %v206_v24 }
 0x163   :  { %210 = vrot.lane.b32.xlu1 %v208_v25, %s1303_s18 }
 0x164   :  { %v201_v26 = vpop.permute.xlu0 %200 }
 0x165   :  { %v203_v27 = vmul.f32 %v1217_v23, %v201_v26 }
 0x1d5   :  { %v211_v28 = vpop.permute.xlu1 %210 }
 0x1d6   :  { %v213_v29 = vadd.f32 %v211_v28, %v203_v27 }
 0x1d8   :  { %1218 = vtanh.f32 %v213_v29 }
 0x1e2   :  { %v1219_v42 = vpop.eup %1218 }
 0x1e3   :  { %216 = vrot.lane.b32.xlu1 %v1219_v42, %s1303_s18 }
 0x255   :  { %v217_v43 = vpop.permute.xlu1 %216 }
 0x256   :  { %v219_v44 = vmul.f32 %v1217_v23, %v217_v43 }
 0x258   :  { %230 = vrot.lane.b32.xlu0 %v219_v44, %s1304_s6 }
 0x2ca   :  { %v231_v45 = vpop.permute.xlu0 %230 }
 0x2cb   :  { %1077 = vmatmul.mubr.msk.f32.vlgmr.msra.gmra.mrb[2].mxu1 %vm38_vm3, %v231_v45 }
 0x2cc   :  { %1156 = vmatpush1.bf16.msra.mxu1 %v1419_v37  ;;  %509 = vmatprep.mubr.f32.mxu1 %v1301_v6 }
 0x2cd   :  { %1158 = vmatprep.subr.bf16.mxu1 %v1421_v38 }
 0x2d0   :  { %1160 = vmatpush1.bf16.msra.mxu1 %v1432_v41 }
 0x2d1   :  { %1170 = vmatprep.subr.bf16.mxu1 %v1408_v33 }
 0x39e   :  { %v311_v47 = vpop.f32.mrb[2].mxu1 }
 0x39f   :  { %v312_v48 = vadd.f32 %v1452_v46, %v311_v47  ;;  %v1455_v49 = vpop.f32.mrb[3].mxu1 }
 0x3a1   :  { %1220 = vtanh.f32 %v312_v48  ;;  %v1078_v51 = vmul.f32 -1.442695, %v312_v48 }
 0x3a3   :  { %1222 = vpow2.f32 %v1078_v51 }
 0x3ab   :  { %v1221_v50 = vpop.eup %1220 }
 0x3ac   :  { %325 = vrot.lane.b32.xlu1 %v1221_v50, %s1303_s18 }
 0x3ad   :  { %v1223_v52 = vpop.eup %1222 }
 0x3ae   :  { %v319_v53 = vadd.f32 1.0, %v1223_v52 }
 0x3b0   :  { %1224 = vrcp.f32 %v319_v53 }
 0x3ba   :  { %v1225_v54 = vpop.eup %1224 }
 0x3bb   :  { %v323_v57 = vmul.f32 %v1225_v54, %v213_v29 }
 0x41e   :  { %v326_v55 = vpop.permute.xlu1 %325 }
 0x41f   :  { %v328_v56 = vmul.f32 %v1225_v54, %v326_v55 }
 0x421   :  { %330 = vrot.lane.b32.xlu0 %v328_v56, %s1303_s18 }
 0x493   :  { %v331_v58 = vpop.permute.xlu0 %330 }
 0x494   :  { %v333_v59 = vadd.f32 %v331_v58, %v323_v57 }
 0x496   :  { %1226 = vtanh.f32 %v333_v59 }
 0x4a0   :  { %v1227_v60 = vpop.eup %1226 }
 0x4a1   :  { %336 = vrot.lane.b32.xlu1 %v1227_v60, %s1303_s18 }
 0x513   :  { %v337_v61 = vpop.permute.xlu1 %336 }
 0x514   :  { %v339_v62 = vmul.f32 %v1225_v54, %v337_v61 }
 0x516   :  { %341 = vrot.lane.b32.xlu0 %v339_v62, %s1304_s6 }
 0x588   :  { %v342_v63 = vpop.permute.xlu0 %341 }
 0x589   :  { %1079 = vmatmul.mubr.msk.f32.vlgmr.msra.gmra.mrb[2].mxu0 %vm38_vm3, %v342_v63 }
 0x58a   :  { %1164 = vmatpush1.bf16.msra.mxu0 %v1419_v37  ;;  %609 = vmatprep.mubr.f32.mxu0 %v1301_v6 }
 0x58b   :  { %1166 = vmatprep.subr.bf16.mxu0 %v1421_v38 }
 0x58e   :  { %1168 = vmatpush1.bf16.msra.mxu0 %v1432_v41 }
 0x58f   :  { %1178 = vmatprep.subr.bf16.mxu0 %v1408_v33 }
 0x65c   :  { %v411_v0 = vpop.f32.mrb[2].mxu0 }
 0x65d   :  { %v412_v1 = vadd.f32 %v1452_v46, %v411_v0  ;;  %v1468_v2 = vpop.f32.mrb[3].mxu0 }
 0x65f   :  { %1228 = vtanh.f32 %v412_v1  ;;  %v1080_v5 = vmul.f32 -1.442695, %v412_v1 }
 0x661   :  { %1230 = vpow2.f32 %v1080_v5 }
 0x669   :  { %v1229_v4 = vpop.eup %1228 }
 0x66a   :  { %425 = vrot.lane.b32.xlu1 %v1229_v4, %s1303_s18 }
 0x66b   :  { %v1231_v7 = vpop.eup %1230 }
 0x66c   :  { %v419_v8 = vadd.f32 1.0, %v1231_v7 }
 0x66e   :  { %1232 = vrcp.f32 %v419_v8 }
 0x678   :  { %v1233_v9 = vpop.eup %1232 }
 0x679   :  { %v423_v12 = vmul.f32 %v1233_v9, %v333_v59 }
 0x6dc   :  { %v426_v10 = vpop.permute.xlu1 %425 }
 0x6dd   :  { %v428_v11 = vmul.f32 %v1233_v9, %v426_v10 }
 0x6df   :  { %430 = vrot.lane.b32.xlu0 %v428_v11, %s1303_s18 }
 0x751   :  { %v431_v13 = vpop.permute.xlu0 %430 }
 0x752   :  { %v433_v14 = vadd.f32 %v431_v13, %v423_v12 }
 0x754   :  { %1234 = vtanh.f32 %v433_v14 }
 0x75e   :  { %v1235_v15 = vpop.eup %1234 }
 0x75f   :  { %436 = vrot.lane.b32.xlu1 %v1235_v15, %s1303_s18 }
 0x7d1   :  { %v437_v16 = vpop.permute.xlu1 %436 }
 0x7d2   :  { %v439_v17 = vmul.f32 %v1233_v9, %v437_v16 }
 0x7d4   :  { %441 = vrot.lane.b32.xlu0 %v439_v17, %s1304_s6 }
 0x846   :  { %v442_v18 = vpop.permute.xlu0 %441 }
 0x847   :  { %1081 = vmatmul.mubr.msk.f32.vlgmr.msra.gmra.mrb[4].mxu1 %vm38_vm3, %v442_v18 }
 0x848   :  { %1172 = vmatpush1.bf16.msra.mxu1 %v1419_v37  ;;  %709 = vmatprep.mubr.f32.mxu1 %v1301_v6 }
 0x849   :  { %1174 = vmatprep.subr.bf16.mxu1 %v1421_v38 }
 0x84c   :  { %1176 = vmatpush1.bf16.msra.mxu1 %v1432_v41 }
 0x84d   :  { %1186 = vmatprep.subr.bf16.mxu1 %v1408_v33 }
 0x91a   :  { %v511_v19 = vpop.f32.mrb[4].mxu1 }
 0x91b   :  { %v512_v20 = vadd.f32 %v1452_v46, %v511_v19  ;;  %v1481_v21 = vpop.f32.mrb[5].mxu1 }
 0x91d   :  { %1236 = vtanh.f32 %v512_v20  ;;  %v1082_v23 = vmul.f32 -1.442695, %v512_v20 }
 0x91f   :  { %1238 = vpow2.f32 %v1082_v23 }
 0x927   :  { %v1237_v22 = vpop.eup %1236 }
 0x928   :  { %525 = vrot.lane.b32.xlu1 %v1237_v22, %s1303_s18 }
 0x929   :  { %v1239_v24 = vpop.eup %1238 }
 0x92a   :  { %v519_v25 = vadd.f32 1.0, %v1239_v24 }
 0x92c   :  { %1240 = vrcp.f32 %v519_v25 }
 0x936   :  { %v1241_v26 = vpop.eup %1240 }
 0x937   :  { %v523_v29 = vmul.f32 %v1241_v26, %v433_v14 }
 0x99a   :  { %v526_v27 = vpop.permute.xlu1 %525 }
 0x99b   :  { %v528_v28 = vmul.f32 %v1241_v26, %v526_v27 }
 0x99d   :  { %530 = vrot.lane.b32.xlu0 %v528_v28, %s1303_s18 }
 0xa0f   :  { %v531_v30 = vpop.permute.xlu0 %530 }
 0xa10   :  { %v533_v31 = vadd.f32 %v531_v30, %v523_v29 }
 0xa12   :  { %1242 = vtanh.f32 %v533_v31 }
 0xa1c   :  { %v1243_v32 = vpop.eup %1242 }
 0xa1d   :  { %536 = vrot.lane.b32.xlu1 %v1243_v32, %s1303_s18 }
 0xa8f   :  { %v537_v34 = vpop.permute.xlu1 %536 }
 0xa90   :  { %v539_v35 = vmul.f32 %v1241_v26, %v537_v34 }
 0xa92   :  { %541 = vrot.lane.b32.xlu0 %v539_v35, %s1304_s6 }
 0xb04   :  { %v542_v36 = vpop.permute.xlu0 %541 }
 0xb05   :  { %1083 = vmatmul.mubr.msk.f32.vlgmr.msra.gmra.mrb[4].mxu0 %vm38_vm3, %v542_v36 }
 0xb06   :  { %1180 = vmatpush1.bf16.msra.mxu0 %v1419_v37  ;;  %809 = vmatprep.mubr.f32.mxu0 %v1301_v6 }
 0xb07   :  { %1182 = vmatprep.subr.bf16.mxu0 %v1421_v38 }
 0xb0a   :  { %1184 = vmatpush1.bf16.msra.mxu0 %v1432_v41 }
 0xb0b   :  { %1193 = vmatprep.subr.bf16.mxu0 %v1300_v3 }
 0xbd8   :  { %v611_v39 = vpop.f32.mrb[4].mxu0 }
 0xbd9   :  { %v612_v40 = vadd.f32 %v1452_v46, %v611_v39  ;;  %v1494_v42 = vpop.f32.mrb[5].mxu0 }
 0xbdb   :  { %1244 = vtanh.f32 %v612_v40  ;;  %v1084_v44 = vmul.f32 -1.442695, %v612_v40 }
 0xbdd   :  { %1246 = vpow2.f32 %v1084_v44 }
 0xbe5   :  { %v1245_v43 = vpop.eup %1244 }
 0xbe6   :  { %625 = vrot.lane.b32.xlu1 %v1245_v43, %s1303_s18 }
 0xbe7   :  { %v1247_v45 = vpop.eup %1246 }
 0xbe8   :  { %v619_v47 = vadd.f32 1.0, %v1247_v45 }
 0xbea   :  { %1248 = vrcp.f32 %v619_v47  ;;  %v240_v47 = vcombine.high %v1452_v46, %v1452_v46 }
 0xbf4   :  { %v1249_v48 = vpop.eup %1248 }
 0xbf5   :  { %v623_v52 = vmul.f32 %v1249_v48, %v533_v31 }
 0xc58   :  { %v626_v50 = vpop.permute.xlu1 %625 }
 0xc59   :  { %v628_v51 = vmul.f32 %v1249_v48, %v626_v50  ;;  %v614_v50 = vadd.f32 %v1494_v42, %v240_v47 }
 0xc5b   :  { %630 = vrot.lane.b32.xlu0 %v628_v51, %s1303_s18 }
 0xccd   :  { %v631_v53 = vpop.permute.xlu0 %630 }
 0xcce   :  { %v633_v54 = vadd.f32 %v631_v53, %v623_v52 }
 0xcd0   :  { %1250 = vtanh.f32 %v633_v54 }
 0xcda   :  { %v1251_v55 = vpop.eup %1250 }
 0xcdb   :  { %636 = vrot.lane.b32.xlu1 %v1251_v55, %s1303_s18 }
 0xd4d   :  { %v637_v56 = vpop.permute.xlu1 %636 }
 0xd4e   :  { %v639_v57 = vmul.f32 %v1249_v48, %v637_v56  ;;  %v414_v48 = vadd.f32 %v1468_v2, %v240_v47 }
 0xd50   :  { %641 = vrot.lane.b32.xlu0 %v639_v57, %s1304_s6 }
 0xdc2   :  { %v642_v58 = vpop.permute.xlu0 %641 }
 0xdc3   :  { %1085 = vmatmul.mubr.msk.f32.vlgmr.msra.gmra.mrb[6].mxu1 %vm38_vm3, %v642_v58 }
 0xdc4   :  { %1188 = vmatpush1.bf16.msra.mxu1 %v1419_v37  ;;  %909 = vmatprep.mubr.f32.mxu1 %v1301_v6 }
 0xdc5   :  { %1190 = vmatprep.subr.bf16.mxu1 %v1421_v38 }
 0xdc8   :  { %1192 = vmatpush1.bf16.msra.mxu1 %v1432_v41 }
 0xe96   :  { %v711_v59 = vpop.f32.mrb[6].mxu1 }
 0xe97   :  { %v712_v60 = vadd.f32 %v1452_v46, %v711_v59  ;;  %v1506_v61 = vpop.f32.mrb[7].mxu1 }
 0xe99   :  { %1252 = vtanh.f32 %v712_v60  ;;  %v1086_v63 = vmul.f32 -1.442695, %v712_v60 }
 0xe9b   :  { %1254 = vpow2.f32 %v1086_v63 }
 0xea3   :  { %v1253_v62 = vpop.eup %1252 }
 0xea4   :  { %725 = vrot.lane.b32.xlu1 %v1253_v62, %s1303_s18 }
 0xea5   :  { %v1255_v0 = vpop.eup %1254 }
 0xea6   :  { %v719_v1 = vadd.f32 1.0, %v1255_v0 }
 0xea8   :  { %1256 = vrcp.f32 %v719_v1 }
 0xeb2   :  { %v1257_v37 = vpop.eup %1256 }
 0xeb3   :  { %v723_v41 = vmul.f32 %v1257_v37, %v633_v54  ;;  %v514_v54 = vadd.f32 %v1481_v21, %v240_v47  ;;  %v314_v21 = vadd.f32 %v1455_v49, %v240_v47 }
 0xf16   :  { %v726_v4 = vpop.permute.xlu1 %725 }
 0xf17   :  { %v728_v5 = vmul.f32 %v1257_v37, %v726_v4 }
 0xf19   :  { %730 = vrot.lane.b32.xlu0 %v728_v5, %s1303_s18 }
 0xf8b   :  { %v731_v7 = vpop.permute.xlu0 %730 }
 0xf8c   :  { %v733_v8 = vadd.f32 %v731_v7, %v723_v41 }
 0xf8e   :  { %1258 = vtanh.f32 %v733_v8 }
 0xf98   :  { %v1259_v9 = vpop.eup %1258 }
 0xf99   :  { %736 = vrot.lane.b32.xlu1 %v1259_v9, %s1303_s18 }
0x100b   :  { %v737_v10 = vpop.permute.xlu1 %736 }
0x100c   :  { %v739_v11 = vmul.f32 %v1257_v37, %v737_v10 }
0x100e   :  { %741 = vrot.lane.b32.xlu0 %v739_v11, %s1304_s6 }
0x1080   :  { %v742_v12 = vpop.permute.xlu0 %741 }
0x1081   :  { %1087 = vmatmul.mubr.msk.f32.vlgmr.msra.gmra.mrb[6].mxu0 %vm38_vm3, %v742_v12 }
0x1082   :  { %1195 = vmatpush3.bf16.msra.mxu0 %v1408_v33  ;;  %1128 = vmatprep.mubr.msk.f32.mxu0 %vm1302_vm1, %v1301_v6 }
0x1083   :  { %1196 = vmatprep.subr.bf16.mxu0 %v1300_v3 }
0x1086   :  { %1198 = vmatpush3.bf16.msra.mxu0 %v1421_v38 }
0x1154   :  { %v811_v13 = vpop.f32.mrb[6].mxu0 }
0x1155   :  { %v812_v14 = vadd.f32 %v1452_v46, %v811_v13  ;;  %v813_v15 = vpop.f32.mrb[7].mxu0 }
0x1156   :  { %v814_v51 = vadd.f32 %v813_v15, %v240_v47 }
0x1157   :  { %1260 = vtanh.f32 %v812_v14  ;;  %v1088_v17 = vmul.f32 -1.442695, %v812_v14 }
0x1159   :  { %1262 = vpow2.f32 %v1088_v17 }
0x1161   :  { %v1261_v16 = vpop.eup %1260 }
0x1162   :  { %825 = vrot.lane.b32.xlu1 %v1261_v16, %s1303_s18 }
0x1163   :  { %v1263_v18 = vpop.eup %1262 }
0x1164   :  { %v819_v19 = vadd.f32 1.0, %v1263_v18 }
0x1166   :  { %1264 = vrcp.f32 %v819_v19 }
0x1170   :  { %v1265_v33 = vpop.eup %1264 }
0x1171   :  { %v823_v3 = vmul.f32 %v1265_v33, %v733_v8 }
0x11d4   :  { %v826_v20 = vpop.permute.xlu1 %825 }
0x11d5   :  { %v828_v6 = vmul.f32 %v1265_v33, %v826_v20 }
0x11d7   :  { %830 = vrot.lane.b32.xlu0 %v828_v6, %s1303_s18 }
0x1249   :  { %v831_v38 = vpop.permute.xlu0 %830 }
0x124a   :  { %v833_v22 = vadd.f32 %v831_v38, %v823_v3 }
0x124c   :  { %1266 = vtanh.f32 %v833_v22 }
0x1256   :  { %v1267_v23 = vpop.eup %1266 }
0x1257   :  { %836 = vrot.lane.b32.xlu1 %v1267_v23, %s1303_s18 }
0x12c9   :  { %v837_v24 = vpop.permute.xlu1 %836 }
0x12ca   :  { %v839_v25 = vmul.f32 %v1265_v33, %v837_v24 }
0x12cc   :  { %841 = vrot.lane.b32.xlu0 %v839_v25, %s1304_s6 }
0x133e   :  { %v842_v26 = vpop.permute.xlu0 %841 }
0x133f   :  { %1089 = vmatmul.mubr.msk.f32.vlgmr.msra.gmra.mrb[8].mxu1 %vm38_vm3, %v842_v26 }
0x1412   :  { %v911_v27 = vpop.f32.mrb[8].mxu1 }
0x1413   :  { %v912_v28 = vadd.f32 %v1452_v46, %v911_v27  ;;  %v913_v29 = vpop.f32.mrb[9].mxu1  ;;  %v714_v46 = vadd.f32 %v1506_v61, %v240_v47 }
0x1414   :  { %v914_v2 = vadd.f32 %v913_v29, %v240_v47 }
0x1415   :  { %1268 = vtanh.f32 %v912_v28  ;;  %v1090_v31 = vmul.f32 -1.442695, %v912_v28 }
0x1417   :  { %1270 = vpow2.f32 %v1090_v31 }
0x141f   :  { %v1269_v30 = vpop.eup %1268 }
0x1420   :  { %925 = vrot.lane.b32.xlu1 %v1269_v30, %s1303_s18 }
0x1421   :  { %v1271_v32 = vpop.eup %1270 }
0x1422   :  { %v919_v34 = vadd.f32 1.0, %v1271_v32 }
0x1424   :  { %1272 = vrcp.f32 %v919_v34 }
0x142e   :  { %v1273_v35 = vpop.eup %1272 }
0x142f   :  { %v923_v40 = vmul.f32 %v1273_v35, %v833_v22 }
0x1492   :  { %v926_v36 = vpop.permute.xlu1 %925 }
0x1493   :  { %v928_v39 = vmul.f32 %v1273_v35, %v926_v36 }
0x1495   :  { %930 = vrot.lane.b32.xlu0 %v928_v39, %s1303_s18 }
0x1507   :  { %v931_v43 = vpop.permute.xlu0 %930 }
0x1508   :  { %v933_v44 = vadd.f32 %v931_v43, %v923_v40 }
0x150a   :  { %1274 = vtanh.f32 %v933_v44 }
0x1514   :  { %v1275_v45 = vpop.eup %1274 }
0x1515   :  { %936 = vrot.lane.b32.xlu1 %v1275_v45, %s1303_s18  ;;  %s1064_s18 = sshll.u32 %s1312_s17, 4  ;;  %s1065_s18 = int_to_ptr.vmem [resolvable:$true] %s1064_s18 }
0x1516   :  { %s1276_s1 = scalar_lea.vmem %s1065_s18, 32  ;;  %p1281_p1 = scmp.lt.s32.totalorder %s1065_s18, %s1065_s18 }
0x1517   :  { %p1277_p0 = scmp.ne.s32.totalorder %s1065_s18, %s1276_s1  ;;  %p1282_p2 = scmp.lt.s32.totalorder %s1276_s1, %s1276_s1 }
0x1519   :  { %1016 = vrot.lane.b32.xlu1 %v414_v48, %s1305_s7  ;;  %p1283_p3 = por %p1282_p2, %p1281_p1 }
0x151b   :  { %p1284_p4 = pnand %p1283_p3, %p1277_p0 }
0x151d   :  { %1024 = vrot.lane.b32.xlu1 %v614_v50, %s1306_s14 }
0x1521   :  { %1032 = vrot.lane.b32.xlu1 %v814_v51, %s1307_s15 }
0x1587   :  { %v937_v52 = vpop.permute.xlu1 %936 }
0x1588   :  { %v939_v53 = vmul.f32 %v1273_v35, %v937_v52 }
0x158a   :  { %941 = vrot.lane.b32.xlu0 %v939_v53, %s1304_s6 }
0x158b   :  { %v1017_v58 = vpop.permute.xlu1 %1016 }
0x158c   :  { %v1044_v61 = vsel %vm1043_vm4, %v314_v21, %v1017_v58 }
0x158e   :  { %1020 = vrot.lane.b32.xlu0 %v514_v54, %s1308_s16 }
0x158f   :  { %v1025_v60 = vpop.permute.xlu1 %1024 }
0x1592   :  { %1028 = vrot.lane.b32.xlu0 %v714_v46, %s1309_s0 }
0x1593   :  { %v1033_v1 = vpop.permute.xlu1 %1032 }
0x1596   :  { %1036 = vrot.lane.b32.xlu0 %v914_v2, %s1310_s3 }
0x15fc   :  { %v942_v42 = vpop.permute.xlu0 %941 }
0x15fd   :  { %1129 = vmatmul.mubr.msk.f32.vlgmr.msra.gmra.mrb[8].mxu0 %vm38_vm3, %v942_v42 }
0x1600   :  { %v1021_v59 = vpop.permute.xlu0 %1020 }
0x1601   :  { %v1046_v63 = vsel %vm1045_vm5, %v1044_v61, %v1021_v59 }
0x1602   :  { %v1048_v0 = vsel %vm1047_vm6, %v1046_v63, %v1025_v60 }
0x1604   :  { %v1029_v62 = vpop.permute.xlu0 %1028 }
0x1605   :  { %v1049_v37 = vsel %vm112_vm2, %v1048_v0, %v1029_v62 }
0x1606   :  { %v1051_v5 = vsel %vm1050_vm7, %v1049_v37, %v1033_v1 }
0x1608   :  { %v1037_v4 = vpop.permute.xlu0 %1036 }
0x1609   :  { %v1053_v41 = vsel %vm1052_vm8, %v1051_v5, %v1037_v4 }
0x16d0   :  { %v1011_v55 = vpop.f32.mrb[8].mxu0 }
0x16d1   :  { %v1012_v56 = vadd.f32 %v1011_v55, %v240_v47  ;;  %v1130_v57 = vpop.f32.mrb[9].mxu0 }
0x16d3   :  { %1040 = vrot.lane.b32.xlu1 %v1012_v56, %s1311_s4 }
0x1745   :  { %v1041_v49 = vpop.permute.xlu1 %1040 }
0x1746   :  { %v1055_v7 = vsel %vm1054_vm9, %v1053_v41, %v1041_v49 }
0x1747   :  { %1057 = vst.msk [vmem:[#allocation2] sm:$0x3] %vm1056_vm10, %v1055_v7 }
0x1748   :  { %1287 = shalt.err (!%p1284_p4)
}
0x1749   :  { %s1288_s20 = scalar_lea.hbm %s1558_s8, 32 }
0x174a   :  { %p1289_p5 = scmp.ne.s32.totalorder %s1558_s8, %s1288_s20  ;;  %p1292_p6 = scmp.lt.u32.totalorder %s1288_s20, %s1558_s8 }
0x174c   :  { %p1294_p7 = pnand %p1292_p6, %p1289_p5 }
0x174e   :  { %1297 = shalt.err (!%p1294_p7)
}
0x174f   :  { %1067 = dma.vmem_to_hbm [thread:$0]  %s1065_s18, 32, %s1558_s8, [#allocation3]  }
0x1750   :  { %1298 = dma.done.wait [#allocation3], 32  }
0x1751   :  { %1299 = vsyncadd [#allocation3], 4294967264 }
0x1752   :  { %1071 = vsyncpa [#allocation3], 1 }

</bundles_post_ra>
